<compile_context>
chip_gen: v7x
topology: tpu7x:2x2x1
jax: 0.10.0
libtpu: 0.0.40
codegen_flags: <defaults>
</compile_context>

<pallas_src>
import jax
import jax.numpy as jnp
from jax import lax
from jax.experimental import pallas as pl
from jax.experimental.pallas import tpu as pltpu

_EPS = 1e-8  # torch.nn.functional.cosine_similarity default


def _pick_lane_chunk(d):
    """Largest 512/1024/2048 lane chunk that evenly divides D; else full D."""
    for c in (2048, 1024, 512):
        if d > c and d % c == 0:
            return c
    return d


def _chip_params():
    kind = ""
    try:
        kind = jax.devices()[0].device_kind.lower()
    except Exception:
        pass
    if "v7" in kind:
        # 2 TensorCores/chip, 64 MiB VMEM per TC: size blocks by the f32
        # working set and keep the scoped-VMEM limit well under 64 MiB.
        return dict(num_cores=2, target_block_bytes=6 << 20,
                    sizing_elem_bytes=4, vmem_cap=48 << 20)
    # v5e / v6e: single TensorCore, 128 MiB VMEM -> bigger blocks, higher cap.
    return dict(num_cores=1, target_block_bytes=12 << 20,
                sizing_elem_bytes=None, vmem_cap=100 << 20)


def _make_kernel(batch, tile_rows, feature_dim, tiles_per_split, total_tiles,
                 needs_mask, edge_start, lane_chunk):
    """Kernel closure over static tiling parameters."""
    num_chunks = feature_dim // lane_chunk

    def _row_reductions(x_ref, y_ref):
        # dot / xx / yy as (TB, 1) f32, upcasting per lane-chunk so live f32
        # intermediates stay bounded (no full-block f32 materialization).
        if num_chunks <= 1:
            x = x_ref[...].astype(jnp.float32)
            y = y_ref[...].astype(jnp.float32)
            dot = jnp.sum(x * y, axis=1, keepdims=True)
            xx = jnp.sum(x * x, axis=1, keepdims=True)
            yy = jnp.sum(y * y, axis=1, keepdims=True)
            return dot, xx, yy

        def body(c, carry):
            dot, xx, yy = carry
            start = pl.multiple_of(c * lane_chunk, lane_chunk)
            xc = x_ref[:, pl.ds(start, lane_chunk)].astype(jnp.float32)
            yc = y_ref[:, pl.ds(start, lane_chunk)].astype(jnp.float32)
            dot = dot + jnp.sum(xc * yc, axis=1, keepdims=True)
            xx = xx + jnp.sum(xc * xc, axis=1, keepdims=True)
            yy = yy + jnp.sum(yc * yc, axis=1, keepdims=True)
            return dot, xx, yy

        zero = jnp.zeros((tile_rows, 1), jnp.float32)
        return lax.fori_loop(0, num_chunks, body, (zero, zero, zero),
                             unroll=True)

    def kernel(x_ref, y_ref, out_ref):
        s = pl.program_id(0)  # split (TensorCore) index
        i = pl.program_id(1)  # batch-tile index within the split

        @pl.when(i == 0)
        def _init():
            out_ref[0] = jnp.zeros((1, 1), jnp.float32)

        dot, xx, yy = _row_reductions(x_ref, y_ref)

        # torch semantics: cos = w12 / sqrt(clamp_min(w1*w2, eps^2)).
        # rsqrt goes to the (idle) EUP slot and removes the per-row divide.
        inv = lax.rsqrt(jnp.maximum(xx * yy, _EPS * _EPS))
        cos = dot * inv                                     # (TB, 1)

        if not needs_mask:
            # No partial tile and no clamped duplicate: always unmasked.
            out_ref[0] += jnp.sum(1.0 - cos, axis=0, keepdims=True)
        else:
            tile_linear = s * tiles_per_split + i
            is_interior = tile_linear < edge_start

            @pl.when(is_interior)
            def _interior():
                out_ref[0] += jnp.sum(1.0 - cos, axis=0, keepdims=True)

            @pl.when(jnp.logical_not(is_interior))
            def _edge():
                row = tile_linear * tile_rows + lax.broadcasted_iota(
                    jnp.int32, (tile_rows, 1), 0)
                valid = jnp.logical_and(row < batch, tile_linear < total_tiles)
                # Keep the where-form: it discards NaN/Inf from garbage rows.
                loss = jnp.where(valid, 1.0 - cos, 0.0)
                out_ref[0] += jnp.sum(loss, axis=0, keepdims=True)

    return kernel


def cosine_similarity_loss(x, y):
    """x, y: (batch, feature_dim) arrays (f32 or bf16). Returns scalar f32 loss."""
    assert x.shape == y.shape and x.ndim == 2
    B, D = x.shape
    itemsize = jnp.dtype(x.dtype).itemsize
    params = _chip_params()
    sizing_bytes = params["sizing_elem_bytes"] or itemsize

    # --- Tile sizing: per-input block budget, sublane-aligned. ---
    tb = max(8, params["target_block_bytes"] // max(1, D * sizing_bytes))
    tb = min(tb, B)
    if tb < B:
        tb = max(8, (tb // 8) * 8)   # multiple of 8 unless it covers the batch

    total_tiles = pl.cdiv(B, tb)
    # Split work across TensorCores only on multi-TC chips (v7x).
    num_splits = params["num_cores"] if total_tiles >= params["num_cores"] else 1
    tiles_per_split = pl.cdiv(total_tiles, num_splits)

    has_partial = (B % tb) != 0
    has_dup = num_splits * tiles_per_split > total_tiles
    needs_mask = has_partial or has_dup
    edge_start = total_tiles - 1 if has_partial else total_tiles

    lane_chunk = _pick_lane_chunk(D)

    kernel = _make_kernel(B, tb, D, tiles_per_split, total_tiles,
                          needs_mask, edge_start, lane_chunk)

    def in_index_map(s, i):
        # Clamp so an odd tile count never produces an out-of-range block;
        # the duplicated tile is fully masked inside the kernel.
        return (jnp.minimum(s * tiles_per_split + i, total_tiles - 1), 0)

    # 2 inputs x 2 pipeline buffers (storage dtype), plus headroom.
    pipeline_bytes = 4 * tb * D * itemsize
    vmem_limit = int(min(max(pipeline_bytes + (8 << 20), 32 << 20),
                         params["vmem_cap"]))

    partial = pl.pallas_call(
        kernel,
        out_shape=jax.ShapeDtypeStruct((num_splits, 1, 1), jnp.float32),
        grid=(num_splits, tiles_per_split),
        in_specs=[
            pl.BlockSpec((tb, D), in_index_map),
            pl.BlockSpec((tb, D), in_index_map),
        ],
        out_specs=pl.BlockSpec((1, 1, 1), lambda s, i: (s, 0, 0)),
        compiler_params=pltpu.CompilerParams(
            dimension_semantics=("parallel", "arbitrary"),
            vmem_limit_bytes=vmem_limit,
        ),
        cost_estimate=pl.CostEstimate(
            flops=6 * B * D,
            transcendentals=B,
            bytes_accessed=2 * B * D * itemsize + num_splits * 4,
        ),
    )(x, y)

    # Combine per-split partial sums; divide by the true batch size once.
    return jnp.sum(partial) / B


if __name__ == "__main__":
    key = jax.random.PRNGKey(0)
    kx, ky = jax.random.split(key)

    batch, feature_dim = 8, 32
    x = jax.random.normal(kx, (batch, feature_dim), dtype=jnp.float32)
    y = jax.random.normal(ky, (batch, feature_dim), dtype=jnp.float32)

    loss = cosine_similarity_loss(x, y)
    jax.block_until_ready(loss)

    # Reference mirroring torch's eps handling: max(||x||*||y||, eps).
    dot_ref = jnp.sum(x * y, axis=1)
    denom_ref = jnp.maximum(
        jnp.linalg.norm(x, axis=1) * jnp.linalg.norm(y, axis=1), _EPS)
    ref = jnp.mean(1.0 - dot_ref / denom_ref)
    assert jnp.allclose(loss, ref, atol=1e-5, rtol=1e-5), (loss, ref)

    print("KERNEL_OK")
</pallas_src>

<mosaic_0001>
module attributes {stable_mosaic.version = 11 : i64} {
  func.func @kernel(%arg0: i32, %arg1: i32, %arg2: memref<8x32xf32, #tpu.memory_space<vmem>>, %arg3: memref<8x32xf32, #tpu.memory_space<vmem>>, %arg4: memref<1x1x1xf32, #tpu.memory_space<vmem>>) attributes {dimension_semantics = [#tpu.dimension_semantics<parallel>, #tpu.dimension_semantics<arbitrary>], iteration_bounds = array<i64: 1, 1>, scalar_prefetch = 0 : i64, scratch_operands = 0 : i64, tpu.core_type = #tpu.core_type<tc>, window_params = [{transform_indices = @transform_0, window_bounds = array<i64: 8, 32>}, {transform_indices = @transform_1, window_bounds = array<i64: 8, 32>}, {transform_indices = @transform_2, window_bounds = array<i64: 1, 1, 1>}]} {
    %c0_i32 = arith.constant 0 : i32
    %0 = arith.cmpi eq, %arg1, %c0_i32 : i32
    %1 = arith.extui %0 : i1 to i32
    %c0_i32_0 = arith.constant 0 : i32
    %2 = arith.cmpi ne, %1, %c0_i32_0 : i32
    scf.if %2 {
      %cst_15 = arith.constant 0.000000e+00 : f32
      %29 = vector.broadcast %cst_15 : f32 to vector<1x1xf32>
      %c0_16 = arith.constant 0 : index
      %c0_17 = arith.constant 0 : index
      %c0_18 = arith.constant 0 : index
      %30 = vector.load %arg4[%c0_16, %c0_17, %c0_18] : memref<1x1x1xf32, #tpu.memory_space<vmem>>, vector<1x1x1xf32>
      %31 = vector.shape_cast %30 : vector<1x1x1xf32> to vector<1x1xf32>
      %32 = vector.shape_cast %29 : vector<1x1xf32> to vector<1x1x1xf32>
      tpu.vector_store %arg4[%c0_16, %c0_17, %c0_18], %32 {strides = array<i32>} : memref<1x1x1xf32, #tpu.memory_space<vmem>>, vector<1x1x1xf32>,
    } else {
    }
    %c0 = arith.constant 0 : index
    %c0_1 = arith.constant 0 : index
    %3 = vector.load %arg2[%c0, %c0_1] : memref<8x32xf32, #tpu.memory_space<vmem>>, vector<8x32xf32>
    %c0_2 = arith.constant 0 : index
    %c0_3 = arith.constant 0 : index
    %4 = vector.load %arg3[%c0_2, %c0_3] : memref<8x32xf32, #tpu.memory_space<vmem>>, vector<8x32xf32>
    %5 = arith.mulf %3, %4 : vector<8x32xf32>
    %cst = arith.constant dense<0.000000e+00> : vector<8xf32>
    %6 = vector.multi_reduction <add>, %5, %cst [1] : vector<8x32xf32> to vector<8xf32>
    %7 = vector.shape_cast %6 : vector<8xf32> to vector<8x1xf32>
    %8 = arith.mulf %3, %3 : vector<8x32xf32>
    %cst_4 = arith.constant dense<0.000000e+00> : vector<8xf32>
    %9 = vector.multi_reduction <add>, %8, %cst_4 [1] : vector<8x32xf32> to vector<8xf32>
    %10 = vector.shape_cast %9 : vector<8xf32> to vector<8x1xf32>
    %11 = arith.mulf %4, %4 : vector<8x32xf32>
    %cst_5 = arith.constant dense<0.000000e+00> : vector<8xf32>
    %12 = vector.multi_reduction <add>, %11, %cst_5 [1] : vector<8x32xf32> to vector<8xf32>
    %13 = vector.shape_cast %12 : vector<8xf32> to vector<8x1xf32>
    %14 = arith.mulf %10, %13 : vector<8x1xf32>
    %cst_6 = arith.constant 1.000000e-16 : f32
    %15 = vector.broadcast %cst_6 : f32 to vector<8x1xf32>
    %16 = arith.maximumf %14, %15 : vector<8x1xf32>
    %17 = math.rsqrt %16 : vector<8x1xf32>
    %18 = arith.mulf %7, %17 : vector<8x1xf32>
    %c0_7 = arith.constant 0 : index
    %c0_8 = arith.constant 0 : index
    %c0_9 = arith.constant 0 : index
    %19 = vector.load %arg4[%c0_7, %c0_8, %c0_9] : memref<1x1x1xf32, #tpu.memory_space<vmem>>, vector<1x1x1xf32>
    %20 = vector.shape_cast %19 : vector<1x1x1xf32> to vector<1x1xf32>
    %cst_10 = arith.constant 1.000000e+00 : f32
    %21 = vector.broadcast %cst_10 : f32 to vector<8x1xf32>
    %22 = arith.subf %21, %18 : vector<8x1xf32>
    %cst_11 = arith.constant dense<0.000000e+00> : vector<1xf32>
    %23 = vector.multi_reduction <add>, %22, %cst_11 [0] : vector<8x1xf32> to vector<1xf32>
    %24 = vector.shape_cast %23 : vector<1xf32> to vector<1x1xf32>
    %25 = arith.addf %20, %24 : vector<1x1xf32>
    %c0_12 = arith.constant 0 : index
    %c0_13 = arith.constant 0 : index
    %c0_14 = arith.constant 0 : index
    %26 = vector.load %arg4[%c0_12, %c0_13, %c0_14] : memref<1x1x1xf32, #tpu.memory_space<vmem>>, vector<1x1x1xf32>
    %27 = vector.shape_cast %26 : vector<1x1x1xf32> to vector<1x1xf32>
    %28 = vector.shape_cast %25 : vector<1x1xf32> to vector<1x1x1xf32>
    tpu.vector_store %arg4[%c0_12, %c0_13, %c0_14], %28 {strides = array<i32>} : memref<1x1x1xf32, #tpu.memory_space<vmem>>, vector<1x1x1xf32>,
    return
  }
  func.func @transform_0(%arg0: i32, %arg1: i32) -> (i32, i32) {
    %c1_i32 = arith.constant 1 : i32
    %0 = arith.muli %arg0, %c1_i32 : i32
    %1 = arith.addi %0, %arg1 : i32
    %c0_i32 = arith.constant 0 : i32
    %2 = arith.minsi %1, %c0_i32 : i32
    %c0_i32_0 = arith.constant 0 : i32
    %c0_i32_1 = arith.constant 0 : i32
    return %2, %c0_i32_0 : i32, i32
  }
  func.func @transform_1(%arg0: i32, %arg1: i32) -> (i32, i32) {
    %c1_i32 = arith.constant 1 : i32
    %0 = arith.muli %arg0, %c1_i32 : i32
    %1 = arith.addi %0, %arg1 : i32
    %c0_i32 = arith.constant 0 : i32
    %2 = arith.minsi %1, %c0_i32 : i32
    %c0_i32_0 = arith.constant 0 : i32
    %c0_i32_1 = arith.constant 0 : i32
    return %2, %c0_i32_0 : i32, i32
  }
  func.func @transform_2(%arg0: i32, %arg1: i32) -> (i32, i32, i32) {
    %c0_i32 = arith.constant 0 : i32
    %c0_i32_0 = arith.constant 0 : i32
    %c0_i32_1 = arith.constant 0 : i32
    return %arg0, %c0_i32, %c0_i32_0 : i32, i32, i32
  }
}

</mosaic_0001>

<bundles_post_ra>
// kernel: tpu_custom_call.1
= control target key start
LH: loop header
LB: loop body
LE: loop exit
PB: predicated region body
PF: predicated region fallthrough
CT: control target
= control target key end

     0   :  { %7 = vsyncpa [#allocation3], 0  ;;  %s243_s0 = inlined_call_operand.hbm [shape: f32[8,32], index: 0, kind: input, shape index: {}]   ;;  %s244_s1 = inlined_call_operand.hbm [shape: f32[8,32], index: 1, kind: input, shape index: {}]   ;;  %s245_s2 = inlined_call_operand.hbm [shape: f32[1,1,1], index: 2, kind: output, shape index: {}]  }
   0x1   :  { %8 = vsyncpa [#allocation6], 0 }
   0x2   :  { %9 = vsyncpa [#allocation4], 0  ;;  %s186_s9 = smov [#allocation2]   ;;  %s187_s11 = smov [#allocation5]  }
   0x3   :  { %s21_s10 = sshll.u32 %s186_s9, 4  ;;  %s36_s12 = sshll.u32 %s187_s11, 4  ;;  %s22_s10 = int_to_ptr.vmem [resolvable:$true] %s21_s10  ;;  %s37_s12 = int_to_ptr.vmem [resolvable:$true] %s36_s12 }
   0x4   :  { %s114_s15 = scalar_lea.hbm %s243_s0, 128 }
   0x5   :  { %p115_p0 = scmp.ne.s32.totalorder %s243_s0, %s114_s15  ;;  %p118_p1 = scmp.lt.u32.totalorder %s114_s15, %s243_s0 }
   0x7   :  { %p120_p2 = pnand %p118_p1, %p115_p0 }
   0x9   :  { %123 = shalt.err (!%p120_p2)
}
   0xa   :  { %s124_s20 = scalar_lea.vmem %s22_s10, 128  ;;  %p129_p4 = scmp.lt.s32.totalorder %s22_s10, %s22_s10 }
   0xb   :  { %p125_p3 = scmp.ne.s32.totalorder %s22_s10, %s124_s20  ;;  %p130_p5 = scmp.lt.s32.totalorder %s124_s20, %s124_s20 }
   0xd   :  { %p131_p6 = por %p130_p5, %p129_p4 }
   0xf   :  { %p132_p7 = pnand %p131_p6, %p125_p3 }
  0x11   :  { %135 = shalt.err (!%p132_p7)
}
  0x12   :  { %24 = dma.hbm_to_vmem [thread:$0]  %s243_s0, 128, %s22_s10, [#allocation3]  }
  0x13   :  { %s136_s25 = scalar_lea.hbm %s244_s1, 128 }
  0x14   :  { %p137_p8 = scmp.ne.s32.totalorder %s244_s1, %s136_s25  ;;  %p140_p9 = scmp.lt.u32.totalorder %s136_s25, %s244_s1 }
  0x16   :  { %p142_p10 = pnand %p140_p9, %p137_p8 }
  0x18   :  { %145 = shalt.err (!%p142_p10)
}
  0x19   :  { %s146_s30 = scalar_lea.vmem %s37_s12, 128  ;;  %p151_p12 = scmp.lt.s32.totalorder %s37_s12, %s37_s12 }
  0x1a   :  { %p147_p11 = scmp.ne.s32.totalorder %s37_s12, %s146_s30  ;;  %p152_p13 = scmp.lt.s32.totalorder %s146_s30, %s146_s30 }
  0x1c   :  { %p153_p0 = por %p152_p13, %p151_p12 }
  0x1e   :  { %p154_p1 = pnand %p153_p0, %p147_p11 }
  0x20   :  { %157 = shalt.err (!%p154_p1)
}
  0x21   :  { %39 = dma.hbm_to_vmem [thread:$0]  %s244_s1, 128, %s37_s12, [#allocation6]  }
  0x22   :  { %180 = dma.done.wait [#allocation3], 128  }
  0x23   :  { %181 = vsyncadd [#allocation3], 4294967168 }
  0x24   :  { %182 = dma.done.wait [#allocation6], 128  }
  0x25   :  { %183 = vsyncadd [#allocation6], 4294967168  ;;  %v58_v0 = vld [vmem:[#allocation2] sm:$0xff]  ;;  %vm61_vm0 = vcmask 261120   ;;  %v59_v1 = vld [vmem:[#allocation5] sm:$0xff]  ;;  %vm56_vm1 = vcmask 0  }
  0x26   :  { %v65_v2 = vmul.f32 %v58_v0, %v58_v0  ;;  %v69_v3 = vmul.f32 %v59_v1, %v59_v1  ;;  %v60_v4 = vmul.f32 %v59_v1, %v58_v0  ;;  %v188_v8 = vmov 0.0   ;;  %s189_s1 = smov [#allocation7]  }
  0x27   :  { %57 = vst.msk [vmem:[#allocation7] sm:$0x1] %vm56_vm1, %v188_v8  ;;  %s94_s4 = sshll.u32 %s189_s1, 4  ;;  %s95_s4 = int_to_ptr.vmem [resolvable:$true] %s94_s4 }
  0x28   :  { %v66_v5 = vsel %vm61_vm0, %v65_v2, 0.0  ;;  %v62_v6 = vsel %vm61_vm0, %v60_v4, 0.0  ;;  %v70_v7 = vsel %vm61_vm0, %v69_v3, 0.0  ;;  %s158_s5 = scalar_lea.vmem %s95_s4, 16  ;;  %s162_s6 = scalar_lea.vmem %s95_s4, 32 }
  0x29   :  { %67 = vadd.xlane.f32.xlu0 %v66_v5  ;;  %63 = vadd.xlane.f32.xlu1 %v62_v6  ;;  %p159_p2 = scmp.ne.s32.totalorder %s95_s4, %s158_s5  ;;  %p163_p3 = scmp.lt.s32.totalorder %s95_s4, %s95_s4 }
  0x2a   :  { %p164_p4 = scmp.lt.s32.totalorder %s162_s6, %s158_s5 }
  0x2c   :  { %p165_p5 = por %p164_p4, %p163_p3 }
  0x2d   :  { %71 = vadd.xlane.f32.xlu0 %v70_v7 }
  0x2e   :  { %v77_v22 = vld [vmem:[#allocation7] sm:$0x1]  ;;  %p166_p6 = pnand %p165_p5, %p159_p2 }
  0xb6   :  { %v68_v9 = vpop.xlane.xlu0 %67  ;;  %v64_v13 = vpop.xlane.xlu1 %63 }
  0xba   :  { %v72_v10 = vpop.xlane.xlu0 %71 }
  0xbb   :  { %v73_v11 = vmul.f32 %v72_v10, %v68_v9 }
  0xbd   :  { %v74_v12 = vmax.f32 %v73_v11, 1e-16 }
  0xbf   :  { %112 = vrsqrt.f32 %v74_v12 }
  0xc9   :  { %v113_v14 = vpop.eup %112 }
  0xca   :  { %v76_v15 = vmul.f32 %v113_v14, %v64_v13 }
  0xcc   :  { %v78_v16 = vsub.f32 1.0, %v76_v15 }
  0xce   :  { %v79_v17 = vrot.slane %v78_v16, 4 }
  0xd0   :  { %v80_v18 = vadd.f32 %v79_v17, %v78_v16 }
  0xd2   :  { %v81_v19 = vrot.slane %v80_v18, 2 }
  0xd4   :  { %v82_v20 = vadd.f32 %v81_v19, %v80_v18 }
  0xd6   :  { %v83_v21 = vrot.slane %v82_v20, 1 }
  0xd8   :  { %v84_v23 = vadd.f32 %v83_v21, %v82_v20 }
  0xda   :  { %v85_v24 = vadd.f32 %v84_v23, %v77_v22 }
  0xdc   :  { %87 = vst.msk [vmem:[#allocation7] sm:$0x1] %vm56_vm1, %v85_v24 }
  0xdd   :  { %169 = shalt.err (!%p166_p6)
}
  0xde   :  { %s170_s9 = scalar_lea.hbm %s245_s2, 16 }
  0xdf   :  { %p171_p7 = scmp.ne.s32.totalorder %s245_s2, %s170_s9  ;;  %p174_p8 = scmp.lt.u32.totalorder %s170_s9, %s245_s2 }
  0xe1   :  { %p176_p9 = pnand %p174_p8, %p171_p7 }
  0xe3   :  { %179 = shalt.err (!%p176_p9)
}
  0xe4   :  { %97 = dma.vmem_to_hbm [thread:$0]  %s95_s4, 16, %s245_s2, [#allocation4]  }
  0xe5   :  { %184 = dma.done.wait [#allocation4], 16  }
  0xe6   :  { %185 = vsyncadd [#allocation4], 4294967280 }
  0xe7   :  { %101 = vsyncpa [#allocation3], 1 }
  0xe8   :  { %102 = vsyncpa [#allocation6], 1 }
  0xe9   :  { %103 = vsyncpa [#allocation4], 1 }

</bundles_post_ra>
